<compile_context>
chip_gen: v5e
topology: v5e:2x2
jax: 0.10.0
libtpu: 0.0.40
codegen_flags: <defaults>
</compile_context>

<pallas_src>
import jax
import jax.numpy as jnp
from jax.experimental import pallas as pl
from jax.experimental.pallas import tpu as pltpu


def _round_up(v, m):
    return ((v + m - 1) // m) * m


def decoder_kernel(x_ref, w1_ref, b1_ref, w2_ref, b2_ref, o_ref):
    # Fused: hidden = relu(x @ W1 + b1); out = hidden @ W2 + b2
    x = x_ref[...]                                        # (TB, n_bottleneck) f32
    # MXU matmuls: operands cast to the weight dtype (no-op for f32; bf16 MXU path
    # for bf16 weights on v5e/v6e/v7x), accumulation in f32.
    h = jnp.dot(x.astype(w1_ref.dtype), w1_ref[...],
                preferred_element_type=jnp.float32)       # (TB, H) f32
    h = jnp.maximum(h + b1_ref[...], 0.0)                 # f32 bias-add + ReLU on VPU
    o = jnp.dot(h.astype(w2_ref.dtype), w2_ref[...],
                preferred_element_type=jnp.float32)       # (TB, N) f32
    o_ref[...] = (o + b2_ref[...]).astype(o_ref.dtype)


def prepare_params(w1, b1, w2, b2, *, weight_dtype=jnp.float32):
    """One-time weight preparation (hoisted out of the forward path).

    w1: (n_bottleneck, n_hidden), b1: (1, n_hidden),
    w2: (n_hidden, n_output),     b2: (1, n_output)   — layout is `x @ W + b`.

    Only lane (column) dims are padded to multiples of 128. W1's row dim stays at the
    true n_bottleneck so x never needs feature padding. Biases are kept f32.
    """
    n_bottleneck, n_hidden = w1.shape
    assert w2.shape[0] == n_hidden
    n_output = w2.shape[1]
    H = _round_up(n_hidden, 128)
    N = _round_up(n_output, 128)

    w1_p = jnp.pad(w1.astype(weight_dtype), ((0, 0), (0, H - n_hidden)))
    b1_p = jnp.pad(b1.astype(jnp.float32), ((0, 0), (0, H - n_hidden)))
    w2_p = jnp.pad(w2.astype(weight_dtype), ((0, H - n_hidden), (0, N - n_output)))
    b2_p = jnp.pad(b2.astype(jnp.float32), ((0, 0), (0, N - n_output)))
    return {"w1": w1_p, "b1": b1_p, "w2": w2_p, "b2": b2_p, "n_output": n_output}


def _choose_tb(batch, block_b):
    # Row tile: multiple of 8 sublanes, capped at block_b, targeting an even number
    # of >= 2 grid steps (balanced work for v7x's 2 TCs; harmless on v5e/v6e) while
    # keeping the padded-batch tail small.
    steps = max(2, pl.cdiv(batch, block_b))
    if steps % 2:
        steps += 1
    tb = _round_up(pl.cdiv(batch, steps), 8)
    return max(8, min(tb, _round_up(block_b, 8)))


def decoder_forward(x, params, *, block_b=1024):
    """x: (B, n_bottleneck) f32. params: output of prepare_params.

    Returns (B, n_output) f32.
    """
    w1, b1, w2, b2 = params["w1"], params["b1"], params["w2"], params["b2"]
    n_output = params["n_output"]

    B, n_bottleneck = x.shape
    assert w1.shape[0] == n_bottleneck
    H = w1.shape[1]          # padded hidden width (multiple of 128)
    N = w2.shape[1]          # padded output width (multiple of 128)

    TB = _choose_tb(B, block_b)
    Bp = _round_up(B, TB)

    x_p = x.astype(jnp.float32)
    if Bp != B:
        x_p = jnp.pad(x_p, ((0, Bp - B), (0, 0)))   # pad batch rows only

    grid = (Bp // TB,)

    out_p = pl.pallas_call(
        decoder_kernel,
        out_shape=jax.ShapeDtypeStruct((Bp, N), jnp.float32),
        grid_spec=pltpu.PrefetchScalarGridSpec(
            num_scalar_prefetch=0,
            grid=grid,
            in_specs=[
                # x: streamed over batch at its true feature width (last dim == full dim)
                pl.BlockSpec((TB, n_bottleneck), lambda i: (i, 0)),
                pl.BlockSpec((n_bottleneck, H), lambda i: (0, 0)),   # W1: resident
                pl.BlockSpec((1, H), lambda i: (0, 0)),              # b1: resident
                pl.BlockSpec((H, N), lambda i: (0, 0)),              # W2: resident
                pl.BlockSpec((1, N), lambda i: (0, 0)),              # b2: resident
            ],
            out_specs=pl.BlockSpec((TB, N), lambda i: (i, 0)),       # lane-dense stores
        ),
        compiler_params=pltpu.CompilerParams(
            dimension_semantics=("parallel",)),
    )(x_p, w1, b1, w2, b2)

    out = out_p[:B] if Bp != B else out_p
    if N != n_output:
        out = out[:, :n_output]
    return out


def init_params(key, n_bottleneck, n_hidden, n_output):
    # Deterministic init mimicking nn.Linear's uniform(-1/sqrt(fan_in), 1/sqrt(fan_in)).
    k1, k2, k3, k4 = jax.random.split(key, 4)
    lim1 = 1.0 / jnp.sqrt(n_bottleneck)
    lim2 = 1.0 / jnp.sqrt(n_hidden)
    w1 = jax.random.uniform(k1, (n_bottleneck, n_hidden), jnp.float32, -lim1, lim1)
    b1 = jax.random.uniform(k2, (1, n_hidden), jnp.float32, -lim1, lim1)
    w2 = jax.random.uniform(k3, (n_hidden, n_output), jnp.float32, -lim2, lim2)
    b2 = jax.random.uniform(k4, (1, n_output), jnp.float32, -lim2, lim2)
    return w1, b1, w2, b2


if __name__ == "__main__":
    key = jax.random.PRNGKey(0)
    kx, kp = jax.random.split(key)

    batch = 512          # -> TB=256, grid=(2,): even step count for v7x's 2 TCs
    n_bottleneck = 16
    n_hidden = 32
    n_output = 64

    x = jax.random.normal(kx, (batch, n_bottleneck), jnp.float32)
    w1, b1, w2, b2 = init_params(kp, n_bottleneck, n_hidden, n_output)

    # Reference in plain JAX (dropout is identity in eval mode).
    ref = jnp.maximum(x @ w1 + b1, 0.0) @ w2 + b2

    # f32 weights: exact check.
    params_f32 = prepare_params(w1, b1, w2, b2, weight_dtype=jnp.float32)
    out = jax.block_until_ready(decoder_forward(x, params_f32, block_b=1024))
    assert out.shape == (batch, n_output)
    assert jnp.allclose(out, ref, atol=1e-5, rtol=1e-5)

    # bf16 weights (recommended for v6e/v7x MXU rate + half the resident weight VMEM):
    # looser tolerance vs the f32 reference.
    params_bf16 = prepare_params(w1, b1, w2, b2, weight_dtype=jnp.bfloat16)
    out_bf16 = jax.block_until_ready(decoder_forward(x, params_bf16, block_b=1024))
    assert out_bf16.shape == (batch, n_output)
    assert jnp.allclose(out_bf16, ref, atol=5e-2, rtol=5e-2)

    print("KERNEL_OK")
</pallas_src>

<mosaic_0001>
module attributes {stable_mosaic.version = 11 : i64} {
  func.func @decoder_kernel(%arg0: i32, %arg1: memref<256x16xf32, #tpu.memory_space<vmem>>, %arg2: memref<16x128xf32, #tpu.memory_space<vmem>>, %arg3: memref<1x128xf32, #tpu.memory_space<vmem>>, %arg4: memref<128x128xf32, #tpu.memory_space<vmem>>, %arg5: memref<1x128xf32, #tpu.memory_space<vmem>>, %arg6: memref<256x128xf32, #tpu.memory_space<vmem>>) attributes {dimension_semantics = [#tpu.dimension_semantics<parallel>], iteration_bounds = array<i64: 2>, scalar_prefetch = 0 : i64, scratch_operands = 0 : i64, tpu.core_type = #tpu.core_type<tc>, window_params = [{transform_indices = @transform_0, window_bounds = array<i64: 256, 16>}, {pipeline_mode = #tpu.pipeline_mode<synchronous>, transform_indices = @transform_1, window_bounds = array<i64: 16, 128>}, {pipeline_mode = #tpu.pipeline_mode<synchronous>, transform_indices = @transform_2, window_bounds = array<i64: 1, 128>}, {pipeline_mode = #tpu.pipeline_mode<synchronous>, transform_indices = @transform_3, window_bounds = array<i64: 128, 128>}, {pipeline_mode = #tpu.pipeline_mode<synchronous>, transform_indices = @transform_4, window_bounds = array<i64: 1, 128>}, {transform_indices = @transform_5, window_bounds = array<i64: 256, 128>}]} {
    %c0 = arith.constant 0 : index
    %c0_0 = arith.constant 0 : index
    %0 = vector.load %arg1[%c0, %c0_0] : memref<256x16xf32, #tpu.memory_space<vmem>>, vector<256x16xf32>
    %c0_1 = arith.constant 0 : index
    %c0_2 = arith.constant 0 : index
    %1 = vector.load %arg2[%c0_1, %c0_2] : memref<16x128xf32, #tpu.memory_space<vmem>>, vector<16x128xf32>
    %cst = arith.constant dense<0.000000e+00> : vector<256x128xf32>
    %2 = tpu.matmul %0, %1, %cst {dimension_numbers = #tpu.dot_dimension_numbers<[1], [0], [0], [1], [0, 0, 1, 1], [], []>} : vector<256x16xf32>, vector<16x128xf32>, vector<256x128xf32> -> vector<256x128xf32>
    %c0_3 = arith.constant 0 : index
    %c0_4 = arith.constant 0 : index
    %3 = vector.load %arg3[%c0_3, %c0_4] : memref<1x128xf32, #tpu.memory_space<vmem>>, vector<1x128xf32>
    %4 = vector.broadcast %3 : vector<1x128xf32> to vector<256x128xf32>
    %5 = arith.addf %2, %4 : vector<256x128xf32>
    %cst_5 = arith.constant 0.000000e+00 : f32
    %6 = vector.broadcast %cst_5 : f32 to vector<256x128xf32>
    %7 = arith.maximumf %5, %6 : vector<256x128xf32>
    %c0_6 = arith.constant 0 : index
    %c0_7 = arith.constant 0 : index
    %8 = vector.load %arg4[%c0_6, %c0_7] : memref<128x128xf32, #tpu.memory_space<vmem>>, vector<128x128xf32>
    %cst_8 = arith.constant dense<0.000000e+00> : vector<256x128xf32>
    %9 = tpu.matmul %7, %8, %cst_8 {dimension_numbers = #tpu.dot_dimension_numbers<[1], [0], [0], [1], [0, 0, 1, 1], [], []>} : vector<256x128xf32>, vector<128x128xf32>, vector<256x128xf32> -> vector<256x128xf32>
    %c0_9 = arith.constant 0 : index
    %c0_10 = arith.constant 0 : index
    %10 = vector.load %arg5[%c0_9, %c0_10] : memref<1x128xf32, #tpu.memory_space<vmem>>, vector<1x128xf32>
    %11 = vector.broadcast %10 : vector<1x128xf32> to vector<256x128xf32>
    %12 = arith.addf %9, %11 : vector<256x128xf32>
    %c0_11 = arith.constant 0 : index
    %c0_12 = arith.constant 0 : index
    %13 = vector.load %arg6[%c0_11, %c0_12] : memref<256x128xf32, #tpu.memory_space<vmem>>, vector<256x128xf32>
    tpu.vector_store %arg6[%c0_11, %c0_12], %12 {strides = array<i32>} : memref<256x128xf32, #tpu.memory_space<vmem>>, vector<256x128xf32>,
    return
  }
  func.func @transform_0(%arg0: i32) -> (i32, i32) {
    %c0_i32 = arith.constant 0 : i32
    %c0_i32_0 = arith.constant 0 : i32
    return %arg0, %c0_i32 : i32, i32
  }
  func.func @transform_1(%arg0: i32) -> (i32, i32) {
    %c0_i32 = arith.constant 0 : i32
    %c0_i32_0 = arith.constant 0 : i32
    %c0_i32_1 = arith.constant 0 : i32
    return %c0_i32, %c0_i32_0 : i32, i32
  }
  func.func @transform_2(%arg0: i32) -> (i32, i32) {
    %c0_i32 = arith.constant 0 : i32
    %c0_i32_0 = arith.constant 0 : i32
    %c0_i32_1 = arith.constant 0 : i32
    return %c0_i32, %c0_i32_0 : i32, i32
  }
  func.func @transform_3(%arg0: i32) -> (i32, i32) {
    %c0_i32 = arith.constant 0 : i32
    %c0_i32_0 = arith.constant 0 : i32
    %c0_i32_1 = arith.constant 0 : i32
    return %c0_i32, %c0_i32_0 : i32, i32
  }
  func.func @transform_4(%arg0: i32) -> (i32, i32) {
    %c0_i32 = arith.constant 0 : i32
    %c0_i32_0 = arith.constant 0 : i32
    %c0_i32_1 = arith.constant 0 : i32
    return %c0_i32, %c0_i32_0 : i32, i32
  }
  func.func @transform_5(%arg0: i32) -> (i32, i32) {
    %c0_i32 = arith.constant 0 : i32
    %c0_i32_0 = arith.constant 0 : i32
    return %arg0, %c0_i32 : i32, i32
  }
}

</mosaic_0001>

<bundles_post_ra>
// kernel: tpu_custom_call.1
= control target key start
LH: loop header
LB: loop body
LE: loop exit
PB: predicated region body
PF: predicated region fallthrough
CT: control target
= control target key end

     0   :  { %10 = vsyncpa [#allocation3], 0  ;;  %s1284_s0 = inlined_call_operand.vmem [shape: f32[512,16], index: 0, kind: input, shape index: {}]   ;;  %s1285_s1 = inlined_call_operand.vmem [shape: f32[16,128], index: 1, kind: input, shape index: {}]   ;;  %s1286_s2 = inlined_call_operand.vmem [shape: f32[1,128], index: 2, kind: input, shape index: {}]   ;;  %s1287_s3 = inlined_call_operand.vmem [shape: f32[128,128], index: 3, kind: input, shape index: {}]   ;;  %s1288_s4 = inlined_call_operand.vmem [shape: f32[1,128], index: 4, kind: input, shape index: {}]   ;;  %s1289_s5 = inlined_call_operand.hbm [shape: f32[512,128], index: 5, kind: output, shape index: {}]  }
   0x1   :  { %12 = vsyncpa [#allocation3 + $0x1], 0  ;;  %s967_s18 = smov 0   ;;  %s969_s19 = smov 0  }
   0x2   :  { %s971_s20 = smov 0   ;;  %s973_s21 = smov 0  }
   0x3 LB: > { %s988_s22 = sadd.s32 4294967295, %s933_s21   ;;  %s749_s23 = sadd.s32 4294967294, %s933_s21   ;;  %s933_s21 = sphi %s973_s21, %s1295_s21   ;;  %s929_s20 = sphi %s971_s20, %s1294_s20   ;;  %s925_s19 = sphi %s969_s19, %s1293_s19   ;;  %s921_s18 = sphi %s967_s18, %s1292_s18  }
   0x4   : > { %s992_s24 = sadd.s32 1, %s933_s21   ;;  %s135_s25 = sadd.s32 1, %s929_s20 }
   0x5   : > { %s132_s26 = ssub.s32 %s933_s21, %s992_s24  ;;  %p145_p0 = scmp.ne.s32.totalorder %s929_s20, %s925_s19 }
   0x6   : > { %p133_p1 = scmp.eq.s32.totalorder %s132_s26, 0  ;;  %p146_p2 = scmp.eq.s32.totalorder %s988_s22, 1 }
   0x7   : > { %p151_p3 = scmp.ne.s32.totalorder %s925_s19, %s921_s18  ;;  %p152_p4 = scmp.eq.s32.totalorder %s749_s23, 1 }
   0x8   : > { %s1003_s27 = scalar_select %p133_p1, %s929_s20, %s135_s25  }
   0x9   : > { %p1005_p5 = por %p146_p2, %p145_p0  ;;  %p1009_p6 = por %p152_p4, %p151_p3 }
   0xa   : > { %p752_p7 = scmp.ge.s32.totalorder %s933_s21, 1  ;;  %p191_p8 = scmp.lt.s32.totalorder %s933_s21, 3 }
   0xc   : > { %p192_p9 = pnand %p752_p7, %p191_p8 }
   0xd   : > { %s754_s9 = sshll.u32 (!%p192_p9), %s988_s22, 5  ;;  %s793_s6 = sshll.u32 (!%p192_p9), %s988_s22, 8 }
   0xe   : > { %195 = sbr.rel (%p192_p9) target bundleno = 523 (0x20b), region = 40  ;;  %p220_p10 = scmp.lt.s32.totalorder (!%p192_p9), %s754_s9, 63 }
   0xf   : > { %s891_s17 = scalar_lea.hbm (!%p192_p9), %s1289_s5, 512 }
  0x13   : > { %v259_v0 = vld [vmem:[%s1285_s1 + $0x8] sm:$0xff]  ;;  %v258_v1 = vld [vmem:[%s1285_s1] sm:$0xff]  ;;  %s1297_s9 = smov (!%p220_p10, %s754_s9), 63  ;;  %vm264_vm0 = vcmask 130048   ;;  %v521_v11 = vld [vmem:[%s1287_s3 + $0x78] sm:$0xff] }
  0x14   : > { %375 = vmatpush.msra.mxu0 %v259_v0  ;;  %794 = vmatpush.msra.mxu3 %v259_v0  ;;  %s755_s10 = sshll.u32 %s1297_s9, 3  ;;  %v520_v12 = vld [vmem:[%s1287_s3 + $0x70] sm:$0xff]  ;;  %v519_v13 = vld [vmem:[%s1287_s3 + $0x68] sm:$0xff]  ;;  %v518_v15 = vld [vmem:[%s1287_s3 + $0x60] sm:$0xff]  ;;  %s683_s9 = scalar_lea.hbm %s1289_s5, %s793_s6 }
  0x15   : > { %s1025_s13 = scalar_lea.vmem %s1284_s0, %s755_s10  ;;  %526 = vmatpush.msra.mxu1 %v521_v11  ;;  %796 = vmatpush.msra.mxu2 %v521_v11  ;;  %v517_v16 = vld [vmem:[%s1287_s3 + $0x58] sm:$0xff]  ;;  %v516_v17 = vld [vmem:[%s1287_s3 + $0x50] sm:$0xff]  ;;  %v515_v18 = vld [vmem:[%s1287_s3 + $0x48] sm:$0xff]  ;;  %s686_s11 = sshll.u32 %s683_s9, 4  ;;  %s687_s11 = int_to_ptr.hbm [resolvable:$true] %s686_s11 }
  0x16   : > { %376 = vmatpush.msra.mxu0 %v258_v1  ;;  %795 = vmatpush.msra.mxu3 %v258_v1  ;;  %v226_v2 = vld [vmem:[%s1025_s13] sm:$0xff]  ;;  %v227_v3 = vld [vmem:[%s1025_s13 + $0x8] sm:$0xff]  ;;  %v228_v4 = vld [vmem:[%s1025_s13 + $0x10] sm:$0xff]  ;;  %s885_s22 = sshra.s32 %s687_s11, 4  ;;  %s886_s22 = int_to_ptr.hbm [resolvable:$true] %s885_s22 }
  0x17   : > { %756 = vmatmul.msk.f32.vlgmr.msra.gmra.mxu0 %vm264_vm0, %v226_v2  ;;  %v229_v5 = vld [vmem:[%s1025_s13 + $0x18] sm:$0xff]  ;;  %v230_v6 = vld [vmem:[%s1025_s13 + $0x20] sm:$0xff]  ;;  %v231_v7 = vld [vmem:[%s1025_s13 + $0x28] sm:$0xff]  ;;  %527 = vmatpush.msra.mxu1 %v520_v12  ;;  %s887_s14 = scalar_lea.hbm %s886_s22, 256  ;;  %p892_p0 = scmp.lt.s32.totalorder %s886_s22, %s1289_s5 }
  0x18   : > { %v232_v8 = vld [vmem:[%s1025_s13 + $0x30] sm:$0xff]  ;;  %v233_v9 = vld [vmem:[%s1025_s13 + $0x38] sm:$0xff]  ;;  %v234_v10 = vld [vmem:[%s1025_s13 + $0x40] sm:$0xff]  ;;  %797 = vmatpush.msrb.mxu3 %v521_v11  ;;  %798 = vmatpush.msra.mxu2 %v520_v12  ;;  %p888_p11 = scmp.ne.s32.totalorder %s886_s22, %s887_s14  ;;  %p893_p1 = scmp.lt.s32.totalorder %s891_s17, %s887_s14 }
  0x19   : > { %v235_v14 = vld [vmem:[%s1025_s13 + $0x48] sm:$0xff]  ;;  %528 = vmatpush.msra.mxu1 %v519_v13  ;;  %v236_v19 = vld [vmem:[%s1025_s13 + $0x50] sm:$0xff]  ;;  %v514_v20 = vld [vmem:[%s1287_s3 + $0x40] sm:$0xff] }
  0x1a   : > { %799 = vmatpush.msrb.mxu3 %v520_v12  ;;  %800 = vmatpush.msra.mxu2 %v519_v13  ;;  %v513_v21 = vld [vmem:[%s1287_s3 + $0x38] sm:$0xff]  ;;  %v512_v22 = vld [vmem:[%s1287_s3 + $0x30] sm:$0xff]  ;;  %v511_v23 = vld [vmem:[%s1287_s3 + $0x28] sm:$0xff]  ;;  %p889_p12 = pnand %p888_p11, %p1005_p5  ;;  %p894_p2 = por %p893_p1, %p892_p0 }
  0x1b   : > { %529 = vmatpush.msra.mxu1 %v518_v15  ;;  %v237_v24 = vld [vmem:[%s1025_s13 + $0x58] sm:$0xff]  ;;  %v510_v25 = vld [vmem:[%s1287_s3 + $0x20] sm:$0xff]  ;;  %v244_v26 = vld [vmem:[%s1025_s13 + $0x90] sm:$0xff] }
  0x1c   : > { %801 = vmatpush.msrb.mxu3 %v519_v13  ;;  %802 = vmatpush.msra.mxu2 %v518_v15  ;;  %v509_v27 = vld [vmem:[%s1287_s3 + $0x18] sm:$0xff]  ;;  %v508_v28 = vld [vmem:[%s1287_s3 + $0x10] sm:$0xff]  ;;  %v238_v29 = vld [vmem:[%s1025_s13 + $0x60] sm:$0xff]  ;;  %p890_p13 = pneg %p889_p12 }
  0x1d   : > { %530 = vmatpush.msra.mxu1 %v517_v16  ;;  %774 = vmatmul.msk.f32.vlgmr.msra.gmra.mxu3 %vm264_vm0, %v244_v26  ;;  %v507_v30 = vld [vmem:[%s1287_s3 + $0x8] sm:$0xff]  ;;  %v506_v31 = vld [vmem:[%s1287_s3] sm:$0xff]  ;;  %v245_v32 = vld [vmem:[%s1025_s13 + $0x98] sm:$0xff] }
  0x1e   : > { %803 = vmatpush.msrb.mxu3 %v518_v15  ;;  %804 = vmatpush.msra.mxu2 %v517_v16  ;;  %v239_v33 = vld [vmem:[%s1025_s13 + $0x68] sm:$0xff]  ;;  %v246_v34 = vld [vmem:[%s1025_s13 + $0xa0] sm:$0xff]  ;;  %v240_v35 = vld [vmem:[%s1025_s13 + $0x70] sm:$0xff]  ;;  %p895_p3 = pnand %p894_p2, %p890_p13 }
  0x1f   : > { %757 = vmatmul.msk.f32.gmra.mxu0 %vm264_vm0, %v227_v3  ;;  %531 = vmatpush.msra.mxu1 %v516_v17  ;;  %v247_v36 = vld [vmem:[%s1025_s13 + $0xa8] sm:$0xff]  ;;  %v241_v37 = vld [vmem:[%s1025_s13 + $0x78] sm:$0xff]  ;;  %v248_v38 = vld [vmem:[%s1025_s13 + $0xb0] sm:$0xff] }
  0x20   : > { %805 = vmatpush.msrb.mxu3 %v517_v16  ;;  %806 = vmatpush.msra.mxu2 %v516_v17  ;;  %v1120_v39 = vld [vmem:[%s1286_s2] ss:$0 sm:$0xff]  ;;  %v249_v44 = vld [vmem:[%s1025_s13 + $0xb8] sm:$0xff]  ;;  %v243_v46 = vld [vmem:[%s1025_s13 + $0x88] sm:$0xff] }
  0x21   : > { %532 = vmatpush.msra.mxu1 %v515_v18  ;;  %v242_v41 = vld [vmem:[%s1025_s13 + $0x80] sm:$0xff]  ;;  %v251_v53 = vld [vmem:[%s1025_s13 + $0xc8] sm:$0xff]  ;;  %v252_v57 = vld [vmem:[%s1025_s13 + $0xd0] sm:$0xff] }
  0x22   : > { %807 = vmatpush.msrb.mxu3 %v516_v17  ;;  %808 = vmatpush.msra.mxu2 %v515_v18  ;;  %v250_v49 = vld [vmem:[%s1025_s13 + $0xc0] sm:$0xff]  ;;  %v253_v61 = vld [vmem:[%s1025_s13 + $0xd8] sm:$0xff] }
  0x23   : > { %533 = vmatpush.msra.mxu1 %v514_v20  ;;  %v254_v1 = vld [vmem:[%s1025_s13 + $0xe0] sm:$0xff]  ;;  %v257_v13 = vld [vmem:[%s1025_s13 + $0xf8] sm:$0xff] }
  0x24   : > { %809 = vmatpush.msrb.mxu3 %v515_v18  ;;  %810 = vmatpush.msra.mxu2 %v514_v20 }
  0x25   : > { %534 = vmatpush.msra.mxu1 %v513_v21  ;;  %775 = vmatmul.msk.f32.gmra.mxu3 %vm264_vm0, %v245_v32 }
  0x26   : > { %811 = vmatpush.msrb.mxu3 %v514_v20  ;;  %812 = vmatpush.msra.mxu2 %v513_v21 }
  0x27   : > { %758 = vmatmul.msk.f32.gmra.mxu0 %vm264_vm0, %v228_v4  ;;  %535 = vmatpush.msra.mxu1 %v512_v22 }
  0x28   : > { %813 = vmatpush.msrb.mxu3 %v513_v21  ;;  %814 = vmatpush.msra.mxu2 %v512_v22 }
  0x29   : > { %536 = vmatpush.msra.mxu1 %v511_v23 }
  0x2a   : > { %815 = vmatpush.msrb.mxu3 %v512_v22  ;;  %816 = vmatpush.msra.mxu2 %v511_v23 }
  0x2b   : > { %537 = vmatpush.msra.mxu1 %v510_v25 }
  0x2c   : > { %817 = vmatpush.msrb.mxu3 %v511_v23  ;;  %818 = vmatpush.msra.mxu2 %v510_v25 }
  0x2d   : > { %538 = vmatpush.msra.mxu1 %v509_v27  ;;  %776 = vmatmul.msk.f32.gmra.mxu3 %vm264_vm0, %v246_v34 }
  0x2e   : > { %819 = vmatpush.msrb.mxu3 %v510_v25  ;;  %820 = vmatpush.msra.mxu2 %v509_v27 }
  0x2f   : > { %759 = vmatmul.msk.f32.gmra.mxu0 %vm264_vm0, %v229_v5  ;;  %539 = vmatpush.msra.mxu1 %v508_v28  ;;  %v255_v5 = vld [vmem:[%s1025_s13 + $0xe8] sm:$0xff] }
  0x30   : > { %821 = vmatpush.msrb.mxu3 %v509_v27  ;;  %822 = vmatpush.msra.mxu2 %v508_v28 }
  0x31   : > { %540 = vmatpush.msra.mxu1 %v507_v30 }
  0x32   : > { %823 = vmatpush.msrb.mxu3 %v508_v28  ;;  %824 = vmatpush.msra.mxu2 %v507_v30 }
  0x33   : > { %541 = vmatpush.msra.mxu1 %v506_v31 }
  0x34   : > { %826 = vmatpush.msra.mxu2 %v506_v31  ;;  %825 = vmatpush.msrb.mxu3 %v507_v30 }
  0x35   : > { %777 = vmatmul.msk.f32.gmra.mxu3 %vm264_vm0, %v247_v36 }
  0x36   : > { %827 = vmatpush.msrb.mxu3 %v506_v31 }
  0x37   : > { %760 = vmatmul.msk.f32.gmra.mxu0 %vm264_vm0, %v230_v6 }
  0x3d   : > { %778 = vmatmul.msk.f32.gmra.mxu3 %vm264_vm0, %v248_v38 }
  0x3f   : > { %761 = vmatmul.msk.f32.gmra.mxu0 %vm264_vm0, %v231_v7 }
  0x45   : > { %779 = vmatmul.msk.f32.gmra.mxu3 %vm264_vm0, %v249_v44 }
  0x47   : > { %762 = vmatmul.msk.f32.gmra.mxu0 %vm264_vm0, %v232_v8 }
  0x4d   : > { %780 = vmatmul.msk.f32.gmra.mxu3 %vm264_vm0, %v250_v49 }
  0x4f   : > { %763 = vmatmul.msk.f32.gmra.mxu0 %vm264_vm0, %v233_v9  ;;  %v256_v9 = vld [vmem:[%s1025_s13 + $0xf0] sm:$0xff]  ;;  %s216_s13 = sand.u32 1, %s925_s19  }
  0x50   : > { %s753_s23 = sshll.u32 %s216_s13, 8  ;;  %s672_s12 = scalar_lea.sflag [#allocation3], %s216_s13 }
  0x51   : > { %s1170_s30 = scalar_lea.vmem [#allocation2], %s753_s23 }
  0x52   : > { %s684_s10 = sshll.u32 %s1170_s30, 4  ;;  %s685_s10 = int_to_ptr.vmem [resolvable:$true] %s684_s10 }
  0x55   : > { %781 = vmatmul.msk.f32.gmra.mxu3 %vm264_vm0, %v251_v53 }
  0x57   : > { %764 = vmatmul.msk.f32.gmra.mxu0 %vm264_vm0, %v234_v10 }
  0x5d   : > { %782 = vmatmul.msk.f32.gmra.mxu3 %vm264_vm0, %v252_v57 }
  0x5f   : > { %765 = vmatmul.msk.f32.gmra.mxu0 %vm264_vm0, %v235_v14 }
  0x65   : > { %783 = vmatmul.msk.f32.gmra.mxu3 %vm264_vm0, %v253_v61 }
  0x67   : > { %766 = vmatmul.msk.f32.gmra.mxu0 %vm264_vm0, %v236_v19 }
  0x6d   : > { %784 = vmatmul.msk.f32.gmra.mxu3 %vm264_vm0, %v254_v1 }
  0x6f   : > { %767 = vmatmul.msk.f32.gmra.mxu0 %vm264_vm0, %v237_v24 }
  0x75   : > { %785 = vmatmul.msk.f32.gmra.mxu3 %vm264_vm0, %v255_v5 }
  0x77   : > { %768 = vmatmul.msk.f32.gmra.mxu0 %vm264_vm0, %v238_v29 }
  0x7d   : > { %786 = vmatmul.msk.f32.gmra.mxu3 %vm264_vm0, %v256_v9 }
  0x7f   : > { %769 = vmatmul.msk.f32.gmra.mxu0 %vm264_vm0, %v239_v33 }
  0x85   : > { %787 = vmatmul.msk.f32.gmra.mxu3 %vm264_vm0, %v257_v13 }
  0x87   : > { %770 = vmatmul.msk.f32.gmra.mxu0 %vm264_vm0, %v240_v35 }
  0x8f   : > { %771 = vmatmul.msk.f32.gmra.mxu0 %vm264_vm0, %v241_v37 }
  0x94   : > { %v378_v40 = vpop.f32.mrf.mxu0 }
  0x95   : > { %v379_v42 = vadd.f32 %v1120_v39, %v378_v40  ;;  %v1166_v40 = vld [vmem:[%s1288_s4] ss:$0 sm:$0xff] }
  0x97   : > { %v474_v43 = vmax.f32 %v379_v42, 0.0  ;;  %772 = vmatmul.msk.f32.gmra.mxu0 %vm264_vm0, %v242_v41 }
  0x99   : > { %542 = vmatmul.f32.vlgmr.msra.gmra.mxu1 %v474_v43 }
  0x9c   : > { %v381_v45 = vpop.f32.mrf.mxu0 }
  0x9d   : > { %v382_v47 = vadd.f32 %v1120_v39, %v381_v45 }
  0x9f   : > { %v475_v48 = vmax.f32 %v382_v47, 0.0  ;;  %773 = vmatmul.msk.f32.gmra.mxu0 %vm264_vm0, %v243_v46 }
  0xa0   : > { %v432_v24 = vpop.f32.mrf.mxu3 }
  0xa1   : > { %545 = vmatmul.f32.gmra.mxu1 %v475_v48  ;;  %v433_v53 = vadd.f32 %v1120_v39, %v432_v24 }
  0xa4   : > { %v384_v50 = vpop.f32.mrf.mxu0 }
  0xa5   : > { %v385_v51 = vadd.f32 %v1120_v39, %v384_v50 }
  0xa7   : > { %v476_v52 = vmax.f32 %v385_v51, 0.0 }
  0xa8   : > { %v435_v28 = vpop.f32.mrf.mxu3 }
  0xa9   : > { %548 = vmatmul.f32.gmra.mxu1 %v476_v52 }
  0xac   : > { %v387_v54 = vpop.f32.mrf.mxu0 }
  0xad   : > { %v388_v55 = vadd.f32 %v1120_v39, %v387_v54 }
  0xaf   : > { %v477_v56 = vmax.f32 %v388_v55, 0.0 }
  0xb0   : > { %v438_v32 = vpop.f32.mrf.mxu3 }
  0xb1   : > { %551 = vmatmul.f32.gmra.mxu1 %v477_v56  ;;  %v492_v56 = vmax.f32 %v433_v53, 0.0 }
  0xb4   : > { %v390_v58 = vpop.f32.mrf.mxu0 }
  0xb5   : > { %v391_v59 = vadd.f32 %v1120_v39, %v390_v58  ;;  %v436_v58 = vadd.f32 %v1120_v39, %v435_v28 }
  0xb7   : > { %v478_v60 = vmax.f32 %v391_v59, 0.0  ;;  %v493_v61 = vmax.f32 %v436_v58, 0.0 }
  0xb8   : > { %v441_v36 = vpop.f32.mrf.mxu3 }
  0xb9   : > { %554 = vmatmul.f32.gmra.mxu1 %v478_v60 }
  0xbc   : > { %v393_v62 = vpop.f32.mrf.mxu0 }
  0xbd   : > { %v394_v63 = vadd.f32 %v1120_v39, %v393_v62 }
  0xbf   : > { %v479_v0 = vmax.f32 %v394_v63, 0.0  ;;  %v439_v63 = vadd.f32 %v1120_v39, %v438_v32 }
  0xc0   : > { %v444_v42 = vpop.f32.mrf.mxu3 }
  0xc1   : > { %557 = vmatmul.f32.gmra.mxu1 %v479_v0  ;;  %v445_v9 = vadd.f32 %v1120_v39, %v444_v42 }
  0xc4   : > { %v396_v2 = vpop.f32.mrf.mxu0 }
  0xc5   : > { %v397_v3 = vadd.f32 %v1120_v39, %v396_v2  ;;  %v494_v2 = vmax.f32 %v439_v63, 0.0 }
  0xc7   : > { %v480_v4 = vmax.f32 %v397_v3, 0.0 }
  0xc8   : > { %v447_v48 = vpop.f32.mrf.mxu3 }
  0xc9   : > { %560 = vmatmul.f32.gmra.mxu1 %v480_v4  ;;  %v442_v4 = vadd.f32 %v1120_v39, %v441_v36 }
  0xcc   : > { %v399_v6 = vpop.f32.mrf.mxu0 }
  0xcd   : > { %v400_v7 = vadd.f32 %v1120_v39, %v399_v6 }
  0xcf   : > { %v481_v8 = vmax.f32 %v400_v7, 0.0  ;;  %v495_v7 = vmax.f32 %v442_v4, 0.0 }
  0xd0   : > { %v450_v54 = vpop.f32.mrf.mxu3 }
  0xd1   : > { %563 = vmatmul.f32.gmra.mxu1 %v481_v8 }
  0xd4   : > { %v402_v10 = vpop.f32.mrf.mxu0 }
  0xd5   : > { %v403_v11 = vadd.f32 %v1120_v39, %v402_v10 }
  0xd7   : > { %v482_v12 = vmax.f32 %v403_v11, 0.0 }
  0xd8   : > { %v453_v59 = vpop.f32.mrf.mxu3 }
  0xd9   : > { %566 = vmatmul.f32.gmra.mxu1 %v482_v12  ;;  %v496_v12 = vmax.f32 %v445_v9, 0.0 }
  0xdc   : > { %v405_v14 = vpop.f32.mrf.mxu0 }
  0xdd   : > { %v406_v15 = vadd.f32 %v1120_v39, %v405_v14  ;;  %v448_v14 = vadd.f32 %v1120_v39, %v447_v48 }
  0xdf   : > { %v483_v16 = vmax.f32 %v406_v15, 0.0 }
  0xe0   : > { %v456_v0 = vpop.f32.mrf.mxu3 }
  0xe1   : > { %569 = vmatmul.f32.gmra.mxu1 %v483_v16 }
  0xe4   : > { %v408_v17 = vpop.f32.mrf.mxu0 }
  0xe5   : > { %v409_v18 = vadd.f32 %v1120_v39, %v408_v17  ;;  %v497_v17 = vmax.f32 %v448_v14, 0.0 }
  0xe7   : > { %v484_v19 = vmax.f32 %v409_v18, 0.0 }
  0xe8   : > { %v459_v5 = vpop.f32.mrf.mxu3 }
  0xe9   : > { %572 = vmatmul.f32.gmra.mxu1 %v484_v19  ;;  %v451_v19 = vadd.f32 %v1120_v39, %v450_v54 }
  0xec   : > { %v411_v20 = vpop.f32.mrf.mxu0 }
  0xed   : > { %v412_v21 = vadd.f32 %v1120_v39, %v411_v20 }
  0xef   : > { %v485_v22 = vmax.f32 %v412_v21, 0.0 }
  0xf0   : > { %v462_v10 = vpop.f32.mrf.mxu3 }
  0xf1   : > { %575 = vmatmul.f32.gmra.mxu1 %v485_v22 }
  0xf4   : > { %v414_v23 = vpop.f32.mrf.mxu0 }
  0xf5   : > { %v415_v25 = vadd.f32 %v1120_v39, %v414_v23  ;;  %v498_v23 = vmax.f32 %v451_v19, 0.0 }
  0xf7   : > { %v486_v26 = vmax.f32 %v415_v25, 0.0 }
  0xf8   : > { %v465_v15 = vpop.f32.mrf.mxu3 }
  0xf9   : > { %578 = vmatmul.f32.gmra.mxu1 %v486_v26  ;;  %v454_v26 = vadd.f32 %v1120_v39, %v453_v59 }
  0xfc   : > { %v417_v27 = vpop.f32.mrf.mxu0 }
  0xfd   : > { %v418_v29 = vadd.f32 %v1120_v39, %v417_v27 }
  0xff   : > { %v487_v30 = vmax.f32 %v418_v29, 0.0 }
 0x100   : > { %v468_v20 = vpop.f32.mrf.mxu3 }
 0x101   : > { %581 = vmatmul.f32.gmra.mxu1 %v487_v30  ;;  %v469_v21 = vadd.f32 %v1120_v39, %v468_v20  ;;  %v499_v30 = vmax.f32 %v454_v26, 0.0 }
 0x103   : > { %v504_v25 = vmax.f32 %v469_v21, 0.0 }
 0x104   : > { %v420_v31 = vpop.f32.mrf.mxu0 }
 0x105   : > { %v421_v33 = vadd.f32 %v1120_v39, %v420_v31  ;;  %632 = vmatmul.f32.vlgmr.msrb.gmra.mxu3 %v504_v25 }
 0x107   : > { %v488_v34 = vmax.f32 %v421_v33, 0.0  ;;  %v457_v33 = vadd.f32 %v1120_v39, %v456_v0 }
 0x108   : > { %v471_v27 = vpop.f32.mrf.mxu3 }
 0x109   : > { %584 = vmatmul.f32.gmra.mxu1 %v488_v34  ;;  %v472_v28 = vadd.f32 %v1120_v39, %v471_v27 }
 0x10b   : > { %v505_v32 = vmax.f32 %v472_v28, 0.0 }
 0x10c   : > { %v423_v35 = vpop.f32.mrf.mxu0 }
 0x10d   : > { %v424_v37 = vadd.f32 %v1120_v39, %v423_v35  ;;  %635 = vmatmul.f32.gmra.mxu3 %v505_v32  ;;  %v500_v35 = vmax.f32 %v457_v33, 0.0 }
 0x10f   : > { %v489_v38 = vmax.f32 %v424_v37, 0.0  ;;  %v460_v37 = vadd.f32 %v1120_v39, %v459_v5 }
 0x111   : > { %587 = vmatmul.f32.vlgmr.msra.gmra.mxu2 %v489_v38 }
 0x114   : > { %v426_v41 = vpop.f32.mrf.mxu0 }
 0x115   : > { %v427_v43 = vadd.f32 %v1120_v39, %v426_v41  ;;  %v501_v41 = vmax.f32 %v460_v37, 0.0 }
 0x116   : > { %v543_v44 = vpop.f32.mrf.mxu1 }
 0x117   : > { %v490_v45 = vmax.f32 %v427_v43, 0.0  ;;  %v544_v46 = vadd.f32 %v1166_v40, %v543_v44  ;;  %v463_v43 = vadd.f32 %v1120_v39, %v462_v10 }
 0x119   : > { %639 = vst [vmem:[%s1170_s30] sm:$0xff] %v544_v46  ;;  %590 = vmatmul.f32.gmra.mxu2 %v490_v45  ;;  %v502_v45 = vmax.f32 %v463_v43, 0.0 }
 0x11c   : > { %v429_v47 = vpop.f32.mrf.mxu0 }
 0x11d   : > { %v430_v49 = vadd.f32 %v1120_v39, %v429_v47  ;;  %v466_v47 = vadd.f32 %v1120_v39, %v465_v15 }
 0x11e   : > { %v546_v50 = vpop.f32.mrf.mxu1 }
 0x11f   : > { %v491_v51 = vmax.f32 %v430_v49, 0.0  ;;  %v547_v52 = vadd.f32 %v1166_v40, %v546_v50  ;;  %v503_v49 = vmax.f32 %v466_v47, 0.0 }
 0x121   : > { %640 = vst [vmem:[%s1170_s30 + $0x8] sm:$0xff] %v547_v52  ;;  %593 = vmatmul.f32.gmra.mxu2 %v491_v51 }
 0x126   : > { %v549_v55 = vpop.f32.mrf.mxu1 }
 0x127   : > { %v550_v57 = vadd.f32 %v1166_v40, %v549_v55 }
 0x129   : > { %641 = vst [vmem:[%s1170_s30 + $0x10] sm:$0xff] %v550_v57  ;;  %596 = vmatmul.f32.gmra.mxu2 %v492_v56 }
 0x12e   : > { %v552_v60 = vpop.f32.mrf.mxu1 }
 0x12f   : > { %v553_v62 = vadd.f32 %v1166_v40, %v552_v60 }
 0x131   : > { %642 = vst [vmem:[%s1170_s30 + $0x18] sm:$0xff] %v553_v62  ;;  %599 = vmatmul.f32.gmra.mxu2 %v493_v61 }
 0x136   : > { %v555_v1 = vpop.f32.mrf.mxu1 }
 0x137   : > { %v556_v3 = vadd.f32 %v1166_v40, %v555_v1 }
 0x139   : > { %643 = vst [vmem:[%s1170_s30 + $0x20] sm:$0xff] %v556_v3  ;;  %602 = vmatmul.f32.gmra.mxu2 %v494_v2 }
 0x13e   : > { %v558_v6 = vpop.f32.mrf.mxu1 }
 0x13f   : > { %v559_v8 = vadd.f32 %v1166_v40, %v558_v6 }
 0x141   : > { %644 = vst [vmem:[%s1170_s30 + $0x28] sm:$0xff] %v559_v8  ;;  %605 = vmatmul.f32.gmra.mxu2 %v495_v7 }
 0x146   : > { %v561_v11 = vpop.f32.mrf.mxu1 }
 0x147   : > { %v562_v13 = vadd.f32 %v1166_v40, %v561_v11 }
 0x149   : > { %645 = vst [vmem:[%s1170_s30 + $0x30] sm:$0xff] %v562_v13  ;;  %608 = vmatmul.f32.gmra.mxu2 %v496_v12 }
 0x14e   : > { %v564_v16 = vpop.f32.mrf.mxu1 }
 0x14f   : > { %v565_v18 = vadd.f32 %v1166_v40, %v564_v16 }
 0x151   : > { %646 = vst [vmem:[%s1170_s30 + $0x38] sm:$0xff] %v565_v18  ;;  %611 = vmatmul.f32.gmra.mxu2 %v497_v17 }
 0x156   : > { %v567_v22 = vpop.f32.mrf.mxu1 }
 0x157   : > { %v568_v24 = vadd.f32 %v1166_v40, %v567_v22 }
 0x159   : > { %647 = vst [vmem:[%s1170_s30 + $0x40] sm:$0xff] %v568_v24  ;;  %614 = vmatmul.f32.gmra.mxu2 %v498_v23 }
 0x15e   : > { %v570_v29 = vpop.f32.mrf.mxu1 }
 0x15f   : > { %v571_v31 = vadd.f32 %v1166_v40, %v570_v29 }
 0x161   : > { %648 = vst [vmem:[%s1170_s30 + $0x48] sm:$0xff] %v571_v31  ;;  %617 = vmatmul.f32.gmra.mxu2 %v499_v30 }
 0x166   : > { %v573_v34 = vpop.f32.mrf.mxu1 }
 0x167   : > { %v574_v36 = vadd.f32 %v1166_v40, %v573_v34 }
 0x169   : > { %649 = vst [vmem:[%s1170_s30 + $0x50] sm:$0xff] %v574_v36  ;;  %620 = vmatmul.f32.gmra.mxu2 %v500_v35 }
 0x16e   : > { %v576_v38 = vpop.f32.mrf.mxu1 }
 0x16f   : > { %v577_v42 = vadd.f32 %v1166_v40, %v576_v38 }
 0x171   : > { %650 = vst [vmem:[%s1170_s30 + $0x58] sm:$0xff] %v577_v42  ;;  %623 = vmatmul.f32.gmra.mxu2 %v501_v41 }
 0x176   : > { %v579_v44 = vpop.f32.mrf.mxu1 }
 0x177   : > { %v580_v46 = vadd.f32 %v1166_v40, %v579_v44 }
 0x179   : > { %651 = vst [vmem:[%s1170_s30 + $0x60] sm:$0xff] %v580_v46  ;;  %626 = vmatmul.f32.gmra.mxu2 %v502_v45 }
 0x17e   : > { %v582_v48 = vpop.f32.mrf.mxu1 }
 0x17f   : > { %v583_v50 = vadd.f32 %v1166_v40, %v582_v48 }
 0x181   : > { %652 = vst [vmem:[%s1170_s30 + $0x68] sm:$0xff] %v583_v50  ;;  %629 = vmatmul.f32.gmra.mxu2 %v503_v49 }
 0x186   : > { %v585_v51 = vpop.f32.mrf.mxu1 }
 0x187   : > { %v586_v52 = vadd.f32 %v1166_v40, %v585_v51 }
 0x188   : > { %v633_v7 = vpop.f32.mrf.mxu3 }
 0x189   : > { %653 = vst [vmem:[%s1170_s30 + $0x70] sm:$0xff] %v586_v52  ;;  %v634_v9 = vadd.f32 %v1166_v40, %v633_v7 }
 0x18b   : > { %669 = vst [vmem:[%s1170_s30 + $0xf0] sm:$0xff] %v634_v9 }
 0x190   : > { %v636_v11 = vpop.f32.mrf.mxu3 }
 0x191   : > { %v637_v13 = vadd.f32 %v1166_v40, %v636_v11 }
 0x193   : > { %670 = vst [vmem:[%s1170_s30 + $0xf8] sm:$0xff] %v637_v13 }
 0x194   : > { %v588_v53 = vpop.f32.mrf.mxu2 }
 0x195   : > { %v589_v54 = vadd.f32 %v1166_v40, %v588_v53 }
 0x197   : > { %654 = vst [vmem:[%s1170_s30 + $0x78] sm:$0xff] %v589_v54 }
 0x19c   : > { %v591_v55 = vpop.f32.mrf.mxu2 }
 0x19d   : > { %v592_v39 = vadd.f32 %v1166_v40, %v591_v55 }
 0x19f   : > { %655 = vst [vmem:[%s1170_s30 + $0x80] sm:$0xff] %v592_v39 }
 0x1a4   : > { %v594_v56 = vpop.f32.mrf.mxu2 }
 0x1a5   : > { %v595_v57 = vadd.f32 %v1166_v40, %v594_v56 }
 0x1a7   : > { %656 = vst [vmem:[%s1170_s30 + $0x88] sm:$0xff] %v595_v57 }
 0x1ac   : > { %v597_v58 = vpop.f32.mrf.mxu2 }
 0x1ad   : > { %v598_v59 = vadd.f32 %v1166_v40, %v597_v58 }
 0x1af   : > { %657 = vst [vmem:[%s1170_s30 + $0x90] sm:$0xff] %v598_v59 }
 0x1b4   : > { %v600_v60 = vpop.f32.mrf.mxu2 }
 0x1b5   : > { %v601_v61 = vadd.f32 %v1166_v40, %v600_v60 }
 0x1b7   : > { %658 = vst [vmem:[%s1170_s30 + $0x98] sm:$0xff] %v601_v61 }
 0x1bc   : > { %v603_v62 = vpop.f32.mrf.mxu2 }
 0x1bd   : > { %v604_v63 = vadd.f32 %v1166_v40, %v603_v62 }
 0x1bf   : > { %659 = vst [vmem:[%s1170_s30 + $0xa0] sm:$0xff] %v604_v63 }
 0x1c4   : > { %v606_v0 = vpop.f32.mrf.mxu2 }
 0x1c5   : > { %v607_v1 = vadd.f32 %v1166_v40, %v606_v0 }
 0x1c7   : > { %660 = vst [vmem:[%s1170_s30 + $0xa8] sm:$0xff] %v607_v1 }
 0x1cc   : > { %v609_v2 = vpop.f32.mrf.mxu2 }
 0x1cd   : > { %v610_v3 = vadd.f32 %v1166_v40, %v609_v2 }
 0x1cf   : > { %661 = vst [vmem:[%s1170_s30 + $0xb0] sm:$0xff] %v610_v3 }
 0x1d4   : > { %v612_v4 = vpop.f32.mrf.mxu2 }
 0x1d5   : > { %v613_v5 = vadd.f32 %v1166_v40, %v612_v4 }
 0x1d7   : > { %662 = vst [vmem:[%s1170_s30 + $0xb8] sm:$0xff] %v613_v5 }
 0x1dc   : > { %v615_v6 = vpop.f32.mrf.mxu2 }
 0x1dd   : > { %v616_v8 = vadd.f32 %v1166_v40, %v615_v6 }
 0x1df   : > { %663 = vst [vmem:[%s1170_s30 + $0xc0] sm:$0xff] %v616_v8 }
 0x1e4   : > { %v618_v10 = vpop.f32.mrf.mxu2 }
 0x1e5   : > { %v619_v12 = vadd.f32 %v1166_v40, %v618_v10 }
 0x1e7   : > { %664 = vst [vmem:[%s1170_s30 + $0xc8] sm:$0xff] %v619_v12 }
 0x1ec   : > { %v621_v14 = vpop.f32.mrf.mxu2 }
 0x1ed   : > { %v622_v15 = vadd.f32 %v1166_v40, %v621_v14 }
 0x1ef   : > { %665 = vst [vmem:[%s1170_s30 + $0xd0] sm:$0xff] %v622_v15 }
 0x1f4   : > { %v624_v16 = vpop.f32.mrf.mxu2 }
 0x1f5   : > { %v625_v17 = vadd.f32 %v1166_v40, %v624_v16 }
 0x1f7   : > { %666 = vst [vmem:[%s1170_s30 + $0xd8] sm:$0xff] %v625_v17 }
 0x1fc   : > { %v627_v18 = vpop.f32.mrf.mxu2 }
 0x1fd   : > { %v628_v19 = vadd.f32 %v1166_v40, %v627_v18 }
 0x1ff   : > { %667 = vst [vmem:[%s1170_s30 + $0xe0] sm:$0xff] %v628_v19 }
 0x204   : > { %v630_v20 = vpop.f32.mrf.mxu2 }
 0x205   : > { %v631_v21 = vadd.f32 %v1166_v40, %v630_v20 }
 0x207   : > { %668 = vst [vmem:[%s1170_s30 + $0xe8] sm:$0xff] %v631_v21 }
 0x208   : > { %898 = shalt.err (!%p895_p3)
}
 0x209   : > { %s935_s13 = smov 128   ;;  %s936_s26 = smov 8  }
 0x20a   : > { %828 = dma.vmem_to_hbm [thread:$0]  (%p1005_p5), %s685_s10, 4096, %s687_s11, %s672_s12, %s935_s13, %s935_s13, %s936_s26  }
 0x20b PF: > { %p834_p4 = scmp.ge.s32.totalorder %s933_s21, 2  ;;  %s701_s30 = sand.u32 1, %s921_s18  }
 0x20c   : > { %s702_s6 = scalar_lea.sflag [#allocation3], %s701_s30 }
 0x20d   : > { %p831_p7 = pnand %p834_p4, %p1009_p6 }
 0x20f   : > { %p832_p8 = pneg %p831_p7 }
 0x211   : > { %916 = dma.done.wait (%p832_p8), %s702_s6, 4096  }
 0x212   : > { %918 = vsyncadd (%p832_p8), %s702_s6, 4294963200  ;;  %p15_p9 = scmp.ge.s32.totalorder %s992_s24, 4   ;;  %s1292_s18 = smov %s925_s19 }
 0x213   : > { %s1293_s19 = smov %s929_s20  ;;  %s1294_s20 = smov %s1003_s27 }
 0x214   : > { %s1295_s21 = smov %s992_s24  ;;  %17 = sbr.rel (!%p15_p9) target bundleno = 3 (0x3), region = 75 }
 0x219   :  { %708 = vsyncpa [#allocation3], 1 }
 0x21a   :  { %710 = vsyncpa [#allocation3 + $0x1], 1 }

</bundles_post_ra>
